<compile_context>
chip_gen: v5e
topology: v5e:2x2
jax: 0.10.0
libtpu: 0.0.40
codegen_flags: <defaults>
</compile_context>

<pallas_src>
import functools

import jax
import jax.numpy as jnp
from jax import lax
from jax.experimental import pallas as pl
from jax.experimental.pallas import tpu as pltpu
import numpy as np


def _round_up(x, m):
    return (x + m - 1) // m * m


def _cdiv(a, b):
    return (a + b - 1) // b


def _largest_divisor_leq(n, cap):
    cap = max(1, min(n, int(cap)))
    for d in range(cap, 0, -1):
        if n % d == 0:
            return d
    return 1


# --------------------------------------------------------------------------
# Fused single-pass kernel: x slab resident in VMEM, 1 read + 1 write of x.
# --------------------------------------------------------------------------
def _fused_kernel(x_ref, w1t_ref, w2t_ref, o_ref, *, inv_hw, bt):
    x = x_ref[...]                                            # (Bt, C, HW)
    xf = x.astype(jnp.float32)

    avg = jnp.sum(xf, axis=-1) * jnp.float32(inv_hw)          # (Bt, C)
    mx = jnp.max(xf, axis=-1)                                 # (Bt, C)

    pooled = jnp.concatenate([avg, mx], axis=0)               # (2*Bt, C)
    h = jnp.maximum(
        jnp.dot(pooled, w1t_ref[...], preferred_element_type=jnp.float32), 0.0)
    o = jnp.dot(h, w2t_ref[...], preferred_element_type=jnp.float32)
    gate = jax.nn.sigmoid(o[:bt] + o[bt:])                    # (Bt, C)

    o_ref[...] = (xf * gate[:, :, None]).astype(o_ref.dtype)


# --------------------------------------------------------------------------
# Two-phase fallback, phase 1: gate = sigmoid(MLP(avg) + MLP(max))
# --------------------------------------------------------------------------
def _gate_kernel(x_ref, w1t_ref, w2t_ref, gate_ref, sum_acc, max_acc,
                 *, hw_true, hw_tile, bt):
    k = pl.program_id(1)                     # HW-tile index (reduction axis)
    n_k = pl.num_programs(1)

    @pl.when(k == 0)
    def _():
        sum_acc[...] = jnp.zeros_like(sum_acc)
        max_acc[...] = jnp.full_like(max_acc, -jnp.inf)

    x = x_ref[...].astype(jnp.float32)       # (Bt, C, HWt)

    def _update(xs, xm):
        sum_acc[...] += jnp.sum(xs, axis=-1)
        max_acc[...] = jnp.maximum(max_acc[...], jnp.max(xm, axis=-1))

    has_tail = (hw_true % hw_tile) != 0      # static Python bool
    if has_tail:
        # Full tiles: no masking work at all.
        @pl.when(k < n_k - 1)
        def _():
            _update(x, x)

        # Tail tile: OOB lanes contain garbage -> mask BOTH sum and max.
        @pl.when(k == n_k - 1)
        def _():
            lane = lax.broadcasted_iota(jnp.int32, x.shape, dimension=2)
            valid = (k * hw_tile + lane) < hw_true
            _update(jnp.where(valid, x, 0.0),
                    jnp.where(valid, x, -jnp.inf))
    else:
        _update(x, x)

    @pl.when(k == n_k - 1)
    def _():
        avg = sum_acc[...] * jnp.float32(1.0 / hw_true)       # (Bt, C)
        mx = max_acc[...]                                     # (Bt, C)
        pooled = jnp.concatenate([avg, mx], axis=0)           # (2*Bt, C)
        h = jnp.maximum(
            jnp.dot(pooled, w1t_ref[...], preferred_element_type=jnp.float32), 0.0)
        o = jnp.dot(h, w2t_ref[...], preferred_element_type=jnp.float32)
        gate_ref[0] = jax.nn.sigmoid(o[:bt] + o[bt:]).astype(gate_ref.dtype)


# --------------------------------------------------------------------------
# Two-phase fallback, phase 2: y = x * gate (broadcast over spatial axis)
# --------------------------------------------------------------------------
def _apply_kernel(x_ref, gate_ref, o_ref):
    g = gate_ref[0]                                           # (Bt, C)
    o_ref[...] = (x_ref[...] * g[:, :, None]).astype(o_ref.dtype)


# --------------------------------------------------------------------------
# Wrapper
# --------------------------------------------------------------------------
def channel_attention(x_nchw, params, *, force_two_phase=False, hw_tile=None):
    """x_nchw: (B, C, H, W); params = (w1, w2) from the shared 1x1-conv MLP."""
    w1, w2 = params                      # w1: (Cout, C, 1, 1), w2: (C, Cout, 1, 1)
    B, C, H, W = x_nchw.shape
    Cout = w1.shape[0]
    HW = H * W
    itemsize = int(np.dtype(x_nchw.dtype).itemsize)

    x = x_nchw.reshape(B, C, HW)         # contiguous merge -> no copy
    w1t = w1.reshape(Cout, C).T          # (C, Cout)
    w2t = w2.reshape(C, Cout).T          # (Cout, C)

    FUSED_BLOCK_CAP = 4 * 1024 * 1024    # per x block (v7x: 64 MiB VMEM budget)
    TWO_PHASE_TARGET = 4 * 1024 * 1024

    slab_per_batch = C * HW * itemsize

    # ---- fused single-pass path: x slab resident in VMEM ----
    if (not force_two_phase) and slab_per_batch <= FUSED_BLOCK_CAP:
        Bt = _largest_divisor_leq(B, FUSED_BLOCK_CAP // slab_per_batch)
        nb = B // Bt
        block_bytes = Bt * slab_per_batch
        vmem_bytes = int(6 * block_bytes) + (8 << 20)

        y = pl.pallas_call(
            functools.partial(_fused_kernel, inv_hw=1.0 / HW, bt=Bt),
            out_shape=jax.ShapeDtypeStruct((B, C, HW), x.dtype),
            grid_spec=pltpu.PrefetchScalarGridSpec(
                num_scalar_prefetch=0,
                grid=(nb,),
                in_specs=[
                    pl.BlockSpec((Bt, C, HW), lambda b: (b, 0, 0)),
                    pl.BlockSpec((C, Cout), lambda b: (0, 0)),
                    pl.BlockSpec((Cout, C), lambda b: (0, 0)),
                ],
                out_specs=pl.BlockSpec((Bt, C, HW), lambda b: (b, 0, 0)),
            ),
            compiler_params=pltpu.CompilerParams(
                dimension_semantics=("parallel",),
                vmem_limit_bytes=vmem_bytes),
        )(x, w1t, w2t)
        return y.reshape(B, C, H, W)

    # ---- two-phase fallback (large images): no pad, cdiv grid ----
    hw_aligned = _round_up(HW, 128)
    hwt_cap = max(128, (TWO_PHASE_TARGET // (C * itemsize)) // 128 * 128)
    HWt = int(hw_tile) if hw_tile is not None else min(hw_aligned, hwt_cap)
    n_hw = _cdiv(HW, HWt)
    Bt = _largest_divisor_leq(B, max(1, TWO_PHASE_TARGET // (C * HWt * itemsize)))
    nb = B // Bt
    block_bytes = Bt * C * HWt * itemsize
    vmem_bytes = int(6 * block_bytes) + (8 << 20)

    # TODO(synk): on v7x with nb == 1 the second TensorCore idles during phase 1;
    # a parallel HW-split producing partial (sum, max) + a combine step would fix it.

    gate3 = pl.pallas_call(
        functools.partial(_gate_kernel, hw_true=HW, hw_tile=HWt, bt=Bt),
        out_shape=jax.ShapeDtypeStruct((nb, Bt, C), jnp.float32),
        grid_spec=pltpu.PrefetchScalarGridSpec(
            num_scalar_prefetch=0,
            grid=(nb, n_hw),
            in_specs=[
                pl.BlockSpec((Bt, C, HWt), lambda b, k: (b, 0, k)),
                pl.BlockSpec((C, Cout), lambda b, k: (0, 0)),
                pl.BlockSpec((Cout, C), lambda b, k: (0, 0)),
            ],
            out_specs=pl.BlockSpec((1, Bt, C), lambda b, k: (b, 0, 0)),
            scratch_shapes=[pltpu.VMEM((Bt, C), jnp.float32),
                            pltpu.VMEM((Bt, C), jnp.float32)],
        ),
        compiler_params=pltpu.CompilerParams(
            dimension_semantics=("parallel", "arbitrary"),
            vmem_limit_bytes=vmem_bytes),
    )(x, w1t, w2t)

    y = pl.pallas_call(
        _apply_kernel,
        out_shape=jax.ShapeDtypeStruct((B, C, HW), x.dtype),
        grid_spec=pltpu.PrefetchScalarGridSpec(
            num_scalar_prefetch=0,
            grid=(nb, n_hw),
            in_specs=[
                pl.BlockSpec((Bt, C, HWt), lambda b, k: (b, 0, k)),
                pl.BlockSpec((1, Bt, C), lambda b, k: (b, 0, 0)),
            ],
            out_specs=pl.BlockSpec((Bt, C, HWt), lambda b, k: (b, 0, k)),
        ),
        compiler_params=pltpu.CompilerParams(
            dimension_semantics=("parallel", "parallel"),
            vmem_limit_bytes=vmem_bytes),
    )(x, gate3)

    return y.reshape(B, C, H, W)


# --------------------------------------------------------------------------
# Pure-JAX reference (mirrors the PyTorch forward exactly)
# --------------------------------------------------------------------------
def channel_attention_ref(x_nchw, params):
    w1, w2 = params
    B, C, H, W = x_nchw.shape
    Cout = w1.shape[0]
    W1 = w1.reshape(Cout, C)
    W2 = w2.reshape(C, Cout)

    avg = jnp.mean(x_nchw, axis=(2, 3))                       # (B, C)
    mx = jnp.max(x_nchw, axis=(2, 3))                         # (B, C)

    def mlp(v):
        h = jnp.maximum(v @ W1.T, 0.0)
        return h @ W2.T

    gate = jax.nn.sigmoid(mlp(avg) + mlp(mx))                 # (B, C)
    return x_nchw * gate[:, :, None, None]


def init_params(key, in_channels, reduction=2):
    out_channels = 1 if in_channels <= reduction else in_channels // reduction
    k1, k2 = jax.random.split(key)
    w1 = jax.random.normal(k1, (out_channels, in_channels, 1, 1), jnp.float32) * 0.2
    w2 = jax.random.normal(k2, (in_channels, out_channels, 1, 1), jnp.float32) * 0.2
    return (w1, w2)


if __name__ == "__main__":
    key = jax.random.PRNGKey(0)
    kx, kp, kx2 = jax.random.split(key, 3)

    # Case 1: small shape -> fused single-pass path.
    B, C, H, W = 2, 8, 16, 16
    x = jax.random.normal(kx, (B, C, H, W), jnp.float32)
    params = init_params(kp, in_channels=C, reduction=2)

    y = jax.block_until_ready(channel_attention(x, params))
    y_ref = jax.block_until_ready(channel_attention_ref(x, params))
    np.testing.assert_allclose(np.asarray(y), np.asarray(y_ref),
                               rtol=1e-3, atol=1e-3)

    # Case 2: exercise the two-phase path with a ragged spatial tail
    # (HW = 10*13 = 130, tile = 128 -> partial tail block, in-kernel masking).
    x2 = jax.random.normal(kx2, (2, 8, 10, 13), jnp.float32)
    y2 = jax.block_until_ready(
        channel_attention(x2, params, force_two_phase=True, hw_tile=128))
    y2_ref = jax.block_until_ready(channel_attention_ref(x2, params))
    np.testing.assert_allclose(np.asarray(y2), np.asarray(y2_ref),
                               rtol=1e-3, atol=1e-3)

    print("KERNEL_OK")
</pallas_src>

<mosaic_0001>
module attributes {stable_mosaic.version = 11 : i64} {
  func.func @_fused_kernel(%arg0: i32, %arg1: memref<2x8x256xf32, #tpu.memory_space<vmem>>, %arg2: memref<8x4xf32, #tpu.memory_space<vmem>>, %arg3: memref<4x8xf32, #tpu.memory_space<vmem>>, %arg4: memref<2x8x256xf32, #tpu.memory_space<vmem>>) attributes {dimension_semantics = [#tpu.dimension_semantics<parallel>], iteration_bounds = array<i64: 1>, scalar_prefetch = 0 : i64, scratch_operands = 0 : i64, tpu.core_type = #tpu.core_type<tc>, window_params = [{transform_indices = @transform_0, window_bounds = array<i64: 2, 8, 256>}, {pipeline_mode = #tpu.pipeline_mode<synchronous>, transform_indices = @transform_1, window_bounds = array<i64: 8, 4>}, {pipeline_mode = #tpu.pipeline_mode<synchronous>, transform_indices = @transform_2, window_bounds = array<i64: 4, 8>}, {transform_indices = @transform_3, window_bounds = array<i64: 2, 8, 256>}]} {
    %c0 = arith.constant 0 : index
    %c0_0 = arith.constant 0 : index
    %c0_1 = arith.constant 0 : index
    %0 = vector.load %arg1[%c0, %c0_0, %c0_1] : memref<2x8x256xf32, #tpu.memory_space<vmem>>, vector<2x8x256xf32>
    %cst = arith.constant dense<0.000000e+00> : vector<2x8xf32>
    %1 = vector.multi_reduction <add>, %0, %cst [2] : vector<2x8x256xf32> to vector<2x8xf32>
    %cst_2 = arith.constant 3.906250e-03 : f32
    %2 = vector.broadcast %cst_2 : f32 to vector<2x8xf32>
    %3 = arith.mulf %1, %2 : vector<2x8xf32>
    %cst_3 = arith.constant dense<0xFF800000> : vector<2x8xf32>
    %4 = vector.multi_reduction <maximumf>, %0, %cst_3 [2] : vector<2x8x256xf32> to vector<2x8xf32>
    %5 = tpu.concatenate %3, %4 in 0 : vector<2x8xf32>, vector<2x8xf32> -> vector<4x8xf32>
    %c0_4 = arith.constant 0 : index
    %c0_5 = arith.constant 0 : index
    %6 = vector.load %arg2[%c0_4, %c0_5] : memref<8x4xf32, #tpu.memory_space<vmem>>, vector<8x4xf32>
    %cst_6 = arith.constant dense<0.000000e+00> : vector<4x4xf32>
    %7 = tpu.matmul %5, %6, %cst_6 {dimension_numbers = #tpu.dot_dimension_numbers<[1], [0], [0], [1], [0, 0, 1, 1], [], []>} : vector<4x8xf32>, vector<8x4xf32>, vector<4x4xf32> -> vector<4x4xf32>
    %cst_7 = arith.constant 0.000000e+00 : f32
    %8 = vector.broadcast %cst_7 : f32 to vector<4x4xf32>
    %9 = arith.maximumf %7, %8 : vector<4x4xf32>
    %c0_8 = arith.constant 0 : index
    %c0_9 = arith.constant 0 : index
    %10 = vector.load %arg3[%c0_8, %c0_9] : memref<4x8xf32, #tpu.memory_space<vmem>>, vector<4x8xf32>
    %cst_10 = arith.constant dense<0.000000e+00> : vector<4x8xf32>
    %11 = tpu.matmul %9, %10, %cst_10 {dimension_numbers = #tpu.dot_dimension_numbers<[1], [0], [0], [1], [0, 0, 1, 1], [], []>} : vector<4x4xf32>, vector<4x8xf32>, vector<4x8xf32> -> vector<4x8xf32>
    %12 = vector.extract_strided_slice %11 {offsets = [0, 0], sizes = [2, 8], strides = [1, 1]} : vector<4x8xf32> to vector<2x8xf32>
    %13 = vector.extract_strided_slice %11 {offsets = [2, 0], sizes = [2, 8], strides = [1, 1]} : vector<4x8xf32> to vector<2x8xf32>
    %14 = arith.addf %12, %13 : vector<2x8xf32>
    %15 = arith.negf %14 : vector<2x8xf32>
    %16 = math.exp %15 : vector<2x8xf32>
    %cst_11 = arith.constant 1.000000e+00 : f32
    %17 = vector.broadcast %cst_11 : f32 to vector<2x8xf32>
    %18 = arith.addf %17, %16 : vector<2x8xf32>
    %19 = arith.divf %17, %18 : vector<2x8xf32>
    %20 = vector.shape_cast %19 : vector<2x8xf32> to vector<2x8x1xf32>
    %21 = vector.broadcast %20 : vector<2x8x1xf32> to vector<2x8x256xf32>
    %22 = arith.mulf %0, %21 : vector<2x8x256xf32>
    %c0_12 = arith.constant 0 : index
    %c0_13 = arith.constant 0 : index
    %c0_14 = arith.constant 0 : index
    %23 = vector.load %arg4[%c0_12, %c0_13, %c0_14] : memref<2x8x256xf32, #tpu.memory_space<vmem>>, vector<2x8x256xf32>
    tpu.vector_store %arg4[%c0_12, %c0_13, %c0_14], %22 {strides = array<i32>} : memref<2x8x256xf32, #tpu.memory_space<vmem>>, vector<2x8x256xf32>,
    return
  }
  func.func @transform_0(%arg0: i32) -> (i32, i32, i32) {
    %c0_i32 = arith.constant 0 : i32
    %c0_i32_0 = arith.constant 0 : i32
    %c0_i32_1 = arith.constant 0 : i32
    return %arg0, %c0_i32, %c0_i32_0 : i32, i32, i32
  }
  func.func @transform_1(%arg0: i32) -> (i32, i32) {
    %c0_i32 = arith.constant 0 : i32
    %c0_i32_0 = arith.constant 0 : i32
    %c0_i32_1 = arith.constant 0 : i32
    return %c0_i32, %c0_i32_0 : i32, i32
  }
  func.func @transform_2(%arg0: i32) -> (i32, i32) {
    %c0_i32 = arith.constant 0 : i32
    %c0_i32_0 = arith.constant 0 : i32
    %c0_i32_1 = arith.constant 0 : i32
    return %c0_i32, %c0_i32_0 : i32, i32
  }
  func.func @transform_3(%arg0: i32) -> (i32, i32, i32) {
    %c0_i32 = arith.constant 0 : i32
    %c0_i32_0 = arith.constant 0 : i32
    %c0_i32_1 = arith.constant 0 : i32
    return %arg0, %c0_i32, %c0_i32_0 : i32, i32, i32
  }
}

</mosaic_0001>

<bundles_post_ra>
// kernel: tpu_custom_call.1
= control target key start
LH: loop header
LB: loop body
LE: loop exit
PB: predicated region body
PF: predicated region fallthrough
CT: control target
= control target key end

     0   :  { %8 = vsyncpa [#allocation3], 0  ;;  %s314_s0 = inlined_call_operand.hbm [shape: f32[2,8,256], index: 0, kind: input, shape index: {}]   ;;  %s315_s1 = inlined_call_operand.vmem [shape: f32[8,4], index: 1, kind: input, shape index: {}]   ;;  %s316_s2 = inlined_call_operand.vmem [shape: f32[4,8], index: 2, kind: input, shape index: {}]   ;;  %s317_s3 = inlined_call_operand.hbm [shape: f32[2,8,256], index: 3, kind: output, shape index: {}]  }
   0x1   :  { %9 = vsyncpa [#allocation4], 0  ;;  %s14_s14 = sshll.u32 %s314_s0, 4  ;;  %s252_s15 = smov [#allocation2]   ;;  %s15_s14 = int_to_ptr.hbm [resolvable:$true] %s14_s14 }
   0x2   :  { %s16_s16 = sshll.u32 %s252_s15, 4  ;;  %s253_s17 = smov 256   ;;  %s17_s16 = int_to_ptr.vmem [resolvable:$true] %s16_s16 }
   0x3   :  { %s254_s18 = smov 16  }
   0x4   :  { %22 = dma.hbm_to_vmem [thread:$0]  %s15_s14, 512, %s17_s16, [#allocation3], %s253_s17, %s253_s17, %s254_s18  }
   0x5   :  { %248 = dma.done.wait [#allocation3], 512  }
   0x6   :  { %249 = vsyncadd [#allocation3], 4294966784  ;;  %v282_v0 = vld [vmem:[#allocation2] sm:$0xff]  ;;  %v284_v1 = vld [vmem:[#allocation2 + $0x8] sm:$0xff]  ;;  %v51_v11 = vlaneseq  ;;  %vm55_vm0 = vcmask 1041409   ;;  %vm62_vm1 = vcmask 1043459  }
   0x7   :  { %v43_v2 = vmax.f32 %v282_v0, %v284_v1  ;;  %v35_v3 = vadd.f32 %v284_v1, %v282_v0  ;;  %v290_v4 = vld [vmem:[#allocation2 + $0x10] sm:$0xff]  ;;  %v292_v5 = vld [vmem:[#allocation2 + $0x18] sm:$0xff]  ;;  %v67_v8 = vld [vmem:[%s315_s1] sm:$0xff]  ;;  %vm65_vm2 = vcmask 1041408   ;;  %vm68_vm3 = vcmask 64512   ;;  %s173_s24 = sshll.u32 %s317_s3, 4  ;;  %s174_s24 = int_to_ptr.hbm [resolvable:$true] %s173_s24 }
   0x8   :  { %v46_v6 = vmax.f32 %v290_v4, %v292_v5  ;;  %v38_v7 = vadd.f32 %v292_v5, %v290_v4  ;;  %87 = vmatpush.msra.mxu0 %v67_v8  ;;  %v52_v12 = vand.u32 127, %v51_v11  ;;  %v93_v24 = vld [vmem:[%s316_s2] sm:$0xf]  ;;  %vm98_vm4 = vcmask 1043456   ;;  %s255_s2 = smov [#allocation5]  }
   0x9   :  { %44 = vmax.xlane.f32.xlu1 %v43_v2  ;;  %36 = vadd.xlane.f32.xlu0 %v35_v3  ;;  %vm94_vm5 = vcmask 31744   ;;  %v147_v27 = vshrl.u32 %v51_v11, 7  ;;  %s171_s21 = sshll.u32 %s255_s2, 4  ;;  %s172_s21 = int_to_ptr.vmem [resolvable:$true] %s171_s21 }
   0xa   :  { %187 = vmatpush.msk.msra.mxu1 %vm98_vm4, %v93_v24 }
   0xb   :  { %194 = vset.pattern.permute.xlu2 %v147_v27  ;;  %195 = vset.pattern.permute.xlu0 %v147_v27 }
  0x11   :  { %47 = vmax.xlane.f32.xlu1 %v46_v6  ;;  %39 = vadd.xlane.f32.xlu0 %v38_v7 }
  0x7c   :  { %v45_v9 = vpop.xlane.xlu1 %44  ;;  %v37_v10 = vpop.xlane.xlu0 %36 }
  0x7d   :  { %v41_v13 = vmul.f32 0.00390625, %v37_v10  ;;  %v60_v18 = vperm.slane %v45_v9, %v52_v12 }
  0x7f   :  { %v53_v19 = vperm.slane %v41_v13, %v52_v12 }
  0x84   :  { %v48_v14 = vpop.xlane.xlu1 %47  ;;  %v40_v15 = vpop.xlane.xlu0 %39 }
  0x85   :  { %v61_v16 = vperm.slane %v48_v14, %v52_v12  ;;  %v42_v17 = vmul.f32 0.00390625, %v40_v15 }
  0x87   :  { %v54_v20 = vperm.slane %v42_v17, %v52_v12  ;;  %v63_v22 = vsel %vm62_vm1, %v61_v16, %v60_v18 }
  0x89   :  { %v56_v21 = vsel %vm55_vm0, %v54_v20, %v53_v19 }
  0x8a   :  { %v66_v23 = vsel %vm65_vm2, %v56_v21, %v63_v22 }
  0x8b   :  { %186 = vmatmul.msk.f32.vlgmr.msra.gmra.mxu0 %vm68_vm3, %v66_v23 }
 0x108   :  { %v89_v25 = vpop.f32.mrf.mxu0 }
 0x109   :  { %v92_v26 = vmax.f32 %v89_v25, 0.0 }
 0x10b   :  { %188 = vmatmul.msk.f32.vlgmr.msra.gmra.mxu1 %vm94_vm5, %v92_v26 }
 0x188   :  { %v119_v28 = vpop.f32.mrf.mxu1 }
 0x189   :  { %v123_v29 = vrot.slane %v119_v28, 2 }
 0x18b   :  { %v125_v30 = vadd.f32 %v123_v29, %v119_v28 }
 0x18d   :  { %v189_v31 = vmul.f32 -1.442695, %v125_v30 }
 0x18f   :  { %196 = vpow2.f32 %v189_v31 }
 0x195   :  { %v197_v32 = vpop.eup %196 }
 0x196   :  { %v129_v33 = vadd.f32 1.0, %v197_v32 }
 0x198   :  { %198 = vrcp.f32 %v129_v33  ;;  %v141_v37 = vand.u32 2147483648, %v129_v33  ;;  %v139_v39 = vand.u32 2147483647, %v129_v33  ;;  %vm135_vm7 = vweird.f32 %v129_v33 }
 0x19a   :  { %v142_v41 = vor.u32 1.1754944e-38, %v141_v37  ;;  %vm140_vm9 = vcmp.eq.f32.partialorder %v139_v39, 8.507059e+37 }
 0x19e   :  { %v199_v34 = vpop.eup %198 }
 0x19f   :  { %v131_v35 = vmul.f32 %v199_v34, %v129_v33  ;;  %vm136_vm6 = vweird.f32 %v199_v34 }
 0x1a0   :  { %vm137_vm8 = vmor %vm135_vm7, %vm136_vm6 }
 0x1a1   :  { %v132_v36 = vsub.f32 1.0, %v131_v35 }
 0x1a3   :  { %v133_v38 = vmul.f32 %v199_v34, %v132_v36 }
 0x1a5   :  { %v134_v40 = vadd.f32 %v199_v34, %v133_v38 }
 0x1a7   :  { %v138_v42 = vsel %vm137_vm8, %v199_v34, %v134_v40 }
 0x1a8   :  { %v143_v43 = vsel %vm140_vm9, %v142_v41, %v138_v42 }
 0x1a9   :  { %v145_v44 = vperm.slane %v143_v43, 0  ;;  %v152_v45 = vperm.slane %v143_v43, 1 }
 0x1ab   :  { %150 = vperm.xlu2 %194, %v145_v44  }
 0x1b3   :  { %157 = vperm.xlu2 %194, %v152_v45  }
 0x205   :  { %v151_v46 = vpop.permute.xlu2 %150 }
 0x206   :  { %v159_v47 = vmul.f32 %v151_v46, %v282_v0  ;;  %v160_v48 = vmul.f32 %v151_v46, %v284_v1 }
 0x208   :  { %163 = vst [vmem:[#allocation5] sm:$0xff] %v159_v47 }
 0x209   :  { %164 = vst [vmem:[#allocation5 + $0x8] sm:$0xff] %v160_v48 }
 0x20d   :  { %v158_v49 = vpop.permute.xlu2 %157 }
 0x20e   :  { %v161_v50 = vmul.f32 %v158_v49, %v290_v4  ;;  %v162_v51 = vmul.f32 %v158_v49, %v292_v5 }
 0x210   :  { %165 = vst [vmem:[#allocation5 + $0x10] sm:$0xff] %v161_v50 }
 0x211   :  { %166 = vst [vmem:[#allocation5 + $0x18] sm:$0xff] %v162_v51 }
 0x212   :  { %179 = dma.vmem_to_hbm [thread:$0]  %s172_s21, 512, %s174_s24, [#allocation4], %s253_s17, %s253_s17, %s254_s18  }
 0x213   :  { %250 = dma.done.wait [#allocation4], 512  }
 0x214   :  { %251 = vsyncadd [#allocation4], 4294966784 }
 0x215   :  { %184 = vsyncpa [#allocation3], 1 }
 0x216   :  { %185 = vsyncpa [#allocation4], 1 }

</bundles_post_ra>
